<compile_context>
chip_gen: v7x
topology: tpu7x:2x2x1
jax: 0.10.0
libtpu: 0.0.40
codegen_flags: <defaults>
</compile_context>

<pallas_src>
import jax
import jax.numpy as jnp
from jax.experimental import pallas as pl
from jax.experimental.pallas import tpu as pltpu


_BLOCK_BYTE_BUDGET = 6 * 1024 * 1024    # per input block (x2 arrays x2 buffers ~ 24 MiB)
_VMEM_LIMIT_BYTES = 48 * 1024 * 1024    # explicit scoped-VMEM limit (safe on v5e/v6e/v7x)


def _plan_rows(total, itemsize, n_comp, budget=_BLOCK_BYTE_BUDGET):
    """Plan a lane-dense (rows, 128) view of a contiguous slab of `total` elements.

    Returns (rows, row_tile, pad_elems) such that:
      * rows * 128 == total + pad_elems
      * row_tile divides rows
      * row_tile is a multiple of the sublane alignment OR row_tile == rows
      * n_comp * row_tile * 128 * itemsize <= budget   (always respected)
    """
    sub = 16 if itemsize < 4 else 8                      # bf16 packs 2 rows/sublane
    max_rt = budget // (n_comp * 128 * itemsize)
    max_rt = max(sub, (max_rt // sub) * sub)

    if total % 128 == 0:
        rows = total // 128
        if rows <= max_rt:
            # whole slab is one row-block (full second-to-last dim is legal)
            return rows, rows, 0
        if rows % sub == 0:
            # largest sublane-aligned divisor of rows within the budget
            best, t = 0, sub
            while t <= max_rt:
                if rows % t == 0:
                    best = t
                t += sub
            if best > 0 and best >= min(max_rt // 4, 256):
                return rows, best, 0
    # ragged or poorly-factorable sizes: right-pad so rows is a multiple of a
    # large, sublane-aligned row tile (padding <= one block's worth).
    rows0 = -(-total // 128)
    rt = min(max_rt, -(-rows0 // sub) * sub)
    rows = -(-rows0 // rt) * rt
    return rows, rt, rows * 128 - total


# ----------------------------- kernels ------------------------------------ #

def _relu_kernel(x_ref, o_ref):
    # flat lane-dense elementwise ReLU over a (row_tile, 128) block
    o_ref[...] = jnp.maximum(x_ref[...], 0.0)


def _qrelu_kernel(x_ref, o_ref):
    # block ref: (4, row_tile, 128); component c -> x_ref[c]
    r, i, j, k = x_ref[0], x_ref[1], x_ref[2], x_ref[3]
    mask = ((r >= 0) & (i >= 0) & (j >= 0) & (k >= 0)).astype(r.dtype)
    o_ref[0] = r * mask
    o_ref[1] = i * mask
    o_ref[2] = j * mask
    o_ref[3] = k * mask


def _make_modrelu_kernel(epsilon):
    def kernel(bias_ref, x_ref, o_ref):
        bias = bias_ref[0]                          # SMEM scalar (traced value)
        r = x_ref[0].astype(jnp.float32)
        i = x_ref[1].astype(jnp.float32)
        j = x_ref[2].astype(jnp.float32)
        k = x_ref[3].astype(jnp.float32)
        mod = jnp.sqrt(r * r + i * i + j * j + k * k)
        act = jnp.maximum(mod - bias, 0.0)
        # exact divide: kernel is HBM-bound, so the extra EUP/VALU work is free
        # and keeps tight parity with the PyTorch reference.
        scale = (act + epsilon) / (mod + epsilon)
        o_ref[0] = (r * scale).astype(o_ref.dtype)
        o_ref[1] = (i * scale).astype(o_ref.dtype)
        o_ref[2] = (j * scale).astype(o_ref.dtype)
        o_ref[3] = (k * scale).astype(o_ref.dtype)
    return kernel


# ----------------------------- wrapper ------------------------------------- #

def quaternion_relu(x, mode="realReLU", bias=None, epsilon=1e-6):
    """Pallas implementation of QuaternionReLU.forward for NCHW input.

    `bias` (modReLU) is a plain scalar, matching the PyTorch module where
    self.bias is a python float in (0,1), not a per-channel Parameter.
    """
    modes = ("realReLU", "modReLU", "qReLU", "noAct")
    if mode not in modes:
        raise Exception("Wrong ReLU mode.Input mode: " + mode)

    # trivial mode: identity -> no kernel, no HBM traffic
    if mode == "noAct":
        return x

    N, C, H, W = x.shape
    itemsize = jnp.dtype(x.dtype).itemsize
    cparams = pltpu.CompilerParams(
        dimension_semantics=("parallel",),
        vmem_limit_bytes=_VMEM_LIMIT_BYTES)

    # ---------------- realReLU: fully flattened lane-dense slab ------------ #
    if mode == "realReLU":
        total = N * C * H * W
        rows, rt, pad = _plan_rows(total, itemsize, n_comp=1)
        xf = x.reshape(-1)                      # free contiguous view
        if pad:
            xf = jnp.pad(xf, (0, pad))          # ragged fallback only
        x2 = xf.reshape(rows, 128)
        out = pl.pallas_call(
            _relu_kernel,
            out_shape=jax.ShapeDtypeStruct((rows, 128), x.dtype),
            grid_spec=pltpu.PrefetchScalarGridSpec(
                num_scalar_prefetch=0,
                grid=(rows // rt,),
                in_specs=[pl.BlockSpec((rt, 128), lambda g: (g, 0))],
                out_specs=pl.BlockSpec((rt, 128), lambda g: (g, 0)),
            ),
            compiler_params=cparams,
        )(x2)
        out = out.reshape(-1)
        if pad:
            out = out[:total]
        return out.reshape(N, C, H, W)

    # ---------------- quaternion-coupled modes: modReLU / qReLU ------------ #
    if C % 4 != 0:
        raise Exception("channel dim must be divisible by 4 (quaternion)")
    P = (C // 4) * H * W                        # per-component contiguous length
    rows, rt, pad = _plan_rows(P, itemsize, n_comp=4)

    xq = x.reshape(N, 4, P)                     # free contiguous view (no transpose)
    if pad:
        xq = jnp.pad(xq, ((0, 0), (0, 0), (0, pad)))   # zero-fill is safe for both modes
    xq = xq.reshape(N, 4, rows, 128)            # lane-dense re-factor, free view

    nr = rows // rt
    grid = (N * nr,)                            # single flattened parallel axis (megacore-friendly)
    block = (pl.Squeezed(), 4, rt, 128)         # kernel ref shape: (4, rt, 128)
    idx = lambda g: (g // nr, 0, g % nr, 0)

    if mode == "modReLU":
        if bias is None:
            raise Exception("modReLU needs a bias")
        bias_arr = jnp.asarray(bias, dtype=jnp.float32).reshape((1,))
        out = pl.pallas_call(
            _make_modrelu_kernel(float(epsilon)),
            out_shape=jax.ShapeDtypeStruct((N, 4, rows, 128), x.dtype),
            grid_spec=pltpu.PrefetchScalarGridSpec(
                num_scalar_prefetch=0,
                grid=grid,
                in_specs=[pl.BlockSpec(memory_space=pltpu.MemorySpace.SMEM),
                          pl.BlockSpec(block, idx)],
                out_specs=pl.BlockSpec(block, idx),
            ),
            compiler_params=cparams,
        )(bias_arr, xq)
    else:  # qReLU
        out = pl.pallas_call(
            _qrelu_kernel,
            out_shape=jax.ShapeDtypeStruct((N, 4, rows, 128), x.dtype),
            grid_spec=pltpu.PrefetchScalarGridSpec(
                num_scalar_prefetch=0,
                grid=grid,
                in_specs=[pl.BlockSpec(block, idx)],
                out_specs=pl.BlockSpec(block, idx),
            ),
            compiler_params=cparams,
        )(xq)

    if pad:
        out = out.reshape(N, 4, rows * 128)[:, :, :P]
    return out.reshape(N, C, H, W)


# ----------------------------- reference / test ---------------------------- #

def _reference(x, mode, bias=None, epsilon=1e-6):
    """Pure-JAX reference mirroring the PyTorch module."""
    if mode == "noAct":
        return x
    if mode == "realReLU":
        return jnp.maximum(x, 0.0)
    Cq = x.shape[1] // 4
    r = x[:, 0:Cq]
    i = x[:, Cq:2 * Cq]
    j = x[:, 2 * Cq:3 * Cq]
    k = x[:, 3 * Cq:4 * Cq]
    if mode == "modReLU":
        mod = jnp.sqrt(r ** 2 + i ** 2 + j ** 2 + k ** 2)
        act = jnp.where(mod - bias >= 0.0, mod - bias, 0.0)
        am = (act + epsilon) / (mod + epsilon)
        return jnp.concatenate([r * am, i * am, j * am, k * am], axis=1)
    mask = ((r >= 0) & (i >= 0) & (j >= 0) & (k >= 0)).astype(x.dtype)
    return jnp.concatenate([r * mask, i * mask, j * mask, k * mask], axis=1)


if __name__ == "__main__":
    key = jax.random.PRNGKey(0)
    MOD_BIAS = 0.5  # deterministic "parameter" for modReLU (float in (0,1))

    test_shapes = [
        (2, 4, 16, 16),    # NCHW, one quaternion channel group, pad-free path
        (2, 12, 10, 10),   # Cq=3, ragged spatial size -> exercises padded fallback
    ]

    for shape in test_shapes:
        key, sub = jax.random.split(key) if False else (key, key)  # keep PRNGKey(0) usage simple
        x = jax.random.normal(jax.random.PRNGKey(0), shape, dtype=jnp.float32)
        for mode in ("realReLU", "modReLU", "qReLU", "noAct"):
            bias = MOD_BIAS if mode == "modReLU" else None
            out = jax.block_until_ready(quaternion_relu(x, mode=mode, bias=bias))
            ref = _reference(x, mode, bias=bias)
            assert out.shape == x.shape and out.dtype == x.dtype
            assert jnp.allclose(out, ref, atol=1e-5, rtol=1e-5), \
                f"mismatch in mode={mode}, shape={shape}"

    print("KERNEL_OK")
</pallas_src>

<mosaic_0001>
module attributes {stable_mosaic.version = 11 : i64} {
  func.func @_relu_kernel(%arg0: i32, %arg1: memref<16x128xf32, #tpu.memory_space<vmem>>, %arg2: memref<16x128xf32, #tpu.memory_space<vmem>>) attributes {dimension_semantics = [#tpu.dimension_semantics<parallel>], iteration_bounds = array<i64: 1>, scalar_prefetch = 0 : i64, scratch_operands = 0 : i64, tpu.core_type = #tpu.core_type<tc>, window_params = [{transform_indices = @transform_0, window_bounds = array<i64: 16, 128>}, {transform_indices = @transform_1, window_bounds = array<i64: 16, 128>}]} {
    %c0 = arith.constant 0 : index
    %c0_0 = arith.constant 0 : index
    %0 = vector.load %arg1[%c0, %c0_0] : memref<16x128xf32, #tpu.memory_space<vmem>>, vector<16x128xf32>
    %cst = arith.constant 0.000000e+00 : f32
    %1 = vector.broadcast %cst : f32 to vector<16x128xf32>
    %2 = arith.maximumf %0, %1 : vector<16x128xf32>
    %c0_1 = arith.constant 0 : index
    %c0_2 = arith.constant 0 : index
    %3 = vector.load %arg2[%c0_1, %c0_2] : memref<16x128xf32, #tpu.memory_space<vmem>>, vector<16x128xf32>
    tpu.vector_store %arg2[%c0_1, %c0_2], %2 {strides = array<i32>} : memref<16x128xf32, #tpu.memory_space<vmem>>, vector<16x128xf32>,
    return
  }
  func.func @transform_0(%arg0: i32) -> (i32, i32) {
    %c0_i32 = arith.constant 0 : i32
    %c0_i32_0 = arith.constant 0 : i32
    return %arg0, %c0_i32 : i32, i32
  }
  func.func @transform_1(%arg0: i32) -> (i32, i32) {
    %c0_i32 = arith.constant 0 : i32
    %c0_i32_0 = arith.constant 0 : i32
    return %arg0, %c0_i32 : i32, i32
  }
}

</mosaic_0001>

<bundles_post_ra>
// kernel: tpu_custom_call.1
= control target key start
LH: loop header
LB: loop body
LE: loop exit
PB: predicated region body
PF: predicated region fallthrough
CT: control target
= control target key end

     0   :  { %6 = vsyncpa [#allocation3], 0  ;;  %s136_s0 = inlined_call_operand.hbm [shape: f32[16,128], index: 0, kind: input, shape index: {}]   ;;  %s137_s1 = inlined_call_operand.hbm [shape: f32[16,128], index: 1, kind: output, shape index: {}]  }
   0x1   :  { %7 = vsyncpa [#allocation4], 0  ;;  %s98_s6 = smov [#allocation2]   ;;  %s50_s10 = scalar_lea.hbm %s136_s0, 256 }
   0x2   :  { %s13_s7 = sshll.u32 %s98_s6, 4  ;;  %p51_p0 = scmp.ne.s32.totalorder %s136_s0, %s50_s10  ;;  %s14_s7 = int_to_ptr.vmem [resolvable:$true] %s13_s7 }
   0x3   :  { %p54_p1 = scmp.lt.u32.totalorder %s50_s10, %s136_s0 }
   0x5   :  { %p56_p2 = pnand %p54_p1, %p51_p0 }
   0x7   :  { %59 = shalt.err (!%p56_p2)
}
   0x8   :  { %s60_s15 = scalar_lea.vmem %s14_s7, 256  ;;  %p65_p4 = scmp.lt.s32.totalorder %s14_s7, %s14_s7 }
   0x9   :  { %p61_p3 = scmp.ne.s32.totalorder %s14_s7, %s60_s15  ;;  %p66_p5 = scmp.lt.s32.totalorder %s60_s15, %s60_s15 }
   0xb   :  { %p67_p6 = por %p66_p5, %p65_p4 }
   0xd   :  { %p68_p7 = pnand %p67_p6, %p61_p3 }
   0xf   :  { %71 = shalt.err (!%p68_p7)
}
  0x10   :  { %s99_s16 = smov 128   ;;  %s100_s17 = smov 8  }
  0x11   :  { %19 = dma.hbm_to_vmem [thread:$0]  %s136_s0, 256, %s14_s7, [#allocation3], %s99_s16, %s99_s16, %s100_s17  }
  0x12   :  { %94 = dma.done.wait [#allocation3], 256  }
  0x13   :  { %95 = vsyncadd [#allocation3], 4294967040  ;;  %s101_s20 = smov [#allocation5]   ;;  %v23_v0 = vld [vmem:[#allocation2] sm:$0xff]  ;;  %v24_v1 = vld [vmem:[#allocation2 + $0x8] sm:$0xff] }
  0x14   :  { %s34_s21 = sshll.u32 %s101_s20, 4  ;;  %v25_v2 = vmax.f32 %v23_v0, 0.0  ;;  %v26_v3 = vmax.f32 %v24_v1, 0.0  ;;  %s35_s21 = int_to_ptr.vmem [resolvable:$true] %s34_s21 }
  0x15   :  { %s72_s22 = scalar_lea.vmem %s35_s21, 256  ;;  %p77_p9 = scmp.lt.s32.totalorder %s35_s21, %s35_s21 }
  0x16   :  { %27 = vst [vmem:[#allocation5] sm:$0xff] %v25_v2  ;;  %28 = vst [vmem:[#allocation5 + $0x8] sm:$0xff] %v26_v3  ;;  %p73_p8 = scmp.ne.s32.totalorder %s35_s21, %s72_s22  ;;  %p78_p10 = scmp.lt.s32.totalorder %s72_s22, %s72_s22 }
  0x18   :  { %p79_p11 = por %p78_p10, %p77_p9 }
  0x1a   :  { %p80_p12 = pnand %p79_p11, %p73_p8 }
  0x1c   :  { %83 = shalt.err (!%p80_p12)
}
  0x1d   :  { %s84_s24 = scalar_lea.hbm %s137_s1, 256 }
  0x1e   :  { %p85_p13 = scmp.ne.s32.totalorder %s137_s1, %s84_s24  ;;  %p88_p0 = scmp.lt.u32.totalorder %s84_s24, %s137_s1 }
  0x20   :  { %p90_p1 = pnand %p88_p0, %p85_p13 }
  0x22   :  { %93 = shalt.err (!%p90_p1)
}
  0x23   :  { %40 = dma.vmem_to_hbm [thread:$0]  %s35_s21, 256, %s137_s1, [#allocation4], %s99_s16, %s99_s16, %s100_s17  }
  0x24   :  { %96 = dma.done.wait [#allocation4], 256  }
  0x25   :  { %97 = vsyncadd [#allocation4], 4294967040 }
  0x26   :  { %44 = vsyncpa [#allocation3], 1 }
  0x27   :  { %45 = vsyncpa [#allocation4], 1 }

</bundles_post_ra>
